<compile_context>
chip_gen: v6e
topology: v6e:2x2x1
jax: 0.10.0
libtpu: 0.0.40
codegen_flags: <defaults>
</compile_context>

<pallas_src>
import jax
import jax.numpy as jnp
from jax import lax
from jax.experimental import pallas as pl
from jax.experimental.pallas import tpu as pltpu

INPUT_SIZE = 128   # stand-in for len(vectorizer.get_feature_names_out())
OUTPUT_SIZE = 4    # len(categorias_dict)
H1, H2, H3 = 64, 32, 16
OUT_PAD = 8        # output rows padded to a full sublane group


def mlp_kernel(x_ref, w1_ref, b1_ref, w2_ref, b2_ref, w3_ref, b3_ref,
               w4_ref, b4_ref, o_ref):
    # In-kernel cast of the streamed x tile (f32 in HBM -> MXU dtype); VPU pack ops are ~free here.
    x = x_ref[...].astype(w1_ref.dtype)                      # (bt, F)

    # Layer 1: contract the feature axis of BOTH operands: (H1, F) x (bt, F) -> (H1, bt).
    # Batch ends up on the 128-lane dim; no wrapper-side transpose of x needed.
    h = lax.dot_general(w1_ref[...], x,
                        dimension_numbers=(((1,), (1,)), ((), ())),
                        preferred_element_type=jnp.float32)
    h = jnp.maximum(h + b1_ref[...], 0.0)

    # Layer 2: (H2, H1) @ (H1, bt) -> (H2, bt)
    h = jnp.dot(w2_ref[...], h.astype(w2_ref.dtype), preferred_element_type=jnp.float32)
    h = jnp.maximum(h + b2_ref[...], 0.0)

    # Layer 3: (H3, H2) @ (H2, bt) -> (H3, bt)
    h = jnp.dot(w3_ref[...], h.astype(w3_ref.dtype), preferred_element_type=jnp.float32)
    h = jnp.maximum(h + b3_ref[...], 0.0)

    # Layer 4 (no activation): (OUT_PAD, H3) @ (H3, bt) -> (OUT_PAD, bt); rows 4..7 are zero
    # (zero-padded w4/b4), so the store is full-sublane, lane-dense and unmasked.
    h = jnp.dot(w4_ref[...], h.astype(w4_ref.dtype), preferred_element_type=jnp.float32)
    o_ref[...] = (h + b4_ref[...]).astype(o_ref.dtype)


def suporte_ti_forward(x, params, *, batch_tile=8192, use_bf16=True, min_grid_steps=1):
    """x: (B, INPUT_SIZE) float32 (stays f32 at rest; cast to bf16 inside the kernel).
    params: PyTorch-layout weights w_i (out, in) and biases b_i (out, 1), all float32.
    min_grid_steps=2 is recommended on v7x so both TensorCores get a grid step."""
    B, F = x.shape
    assert F == INPUT_SIZE

    LANE = 128
    Bp_lane = pl.cdiv(B, LANE) * LANE            # batch padded to lane width
    bt = min(int(batch_tile), Bp_lane)           # don't waste work on padding for small B
    if min_grid_steps > 1:                       # v7x: give each TensorCore >= 1 grid step
        bt = min(bt, max(LANE, pl.cdiv(Bp_lane, min_grid_steps)))
    bt = pl.cdiv(bt, LANE) * LANE
    Bp = pl.cdiv(B, bt) * bt

    # Pad ragged batches with zero rows (only touched when B % bt != 0); padded rows are
    # independent garbage through bias+ReLU and are sliced off below.
    if Bp != B:
        x = jnp.pad(x, ((0, Bp - B), (0, 0)))

    mxu_dtype = jnp.bfloat16 if use_bf16 else jnp.float32
    # Weights/biases are tiny (~43 KB total): cast once in the wrapper, keep resident in VMEM.
    w1 = params["w1"].astype(mxu_dtype)
    w2 = params["w2"].astype(mxu_dtype)
    w3 = params["w3"].astype(mxu_dtype)
    # Pad the last layer to OUT_PAD rows so the output block is a full (8, bt) tile.
    w4 = jnp.pad(params["w4"], ((0, OUT_PAD - OUTPUT_SIZE), (0, 0))).astype(mxu_dtype)
    b1 = params["b1"].astype(jnp.float32)
    b2 = params["b2"].astype(jnp.float32)
    b3 = params["b3"].astype(jnp.float32)
    b4 = jnp.pad(params["b4"], ((0, OUT_PAD - OUTPUT_SIZE), (0, 0))).astype(jnp.float32)

    full = lambda arr: pl.BlockSpec(arr.shape, lambda i: (0, 0))  # grid-resident constants

    outT = pl.pallas_call(
        mlp_kernel,
        out_shape=jax.ShapeDtypeStruct((OUT_PAD, Bp), jnp.float32),
        grid_spec=pltpu.PrefetchScalarGridSpec(
            num_scalar_prefetch=0,
            grid=(Bp // bt,),
            in_specs=[
                pl.BlockSpec((bt, F), lambda i: (i, 0)),   # x streamed in natural layout
                full(w1), full(b1),
                full(w2), full(b2),
                full(w3), full(b3),
                full(w4), full(b4),
            ],
            out_specs=pl.BlockSpec((OUT_PAD, bt), lambda i: (0, i)),
        ),
        compiler_params=pltpu.CompilerParams(
            dimension_semantics=("parallel",),
            vmem_limit_bytes=32 * 1024 * 1024),   # headroom; <= physical on v5e/v6e/v7x
    )(x, w1, b1, w2, b2, w3, b3, w4, b4)

    return outT[:OUTPUT_SIZE, :B].T  # (B, OUTPUT_SIZE)


def init_params(key):
    """Deterministic init mirroring nn.Linear: weights (out, in), biases (out, 1)."""
    ks = jax.random.split(key, 8)

    def linear(kw, kb, fan_in, fan_out):
        bound = 1.0 / jnp.sqrt(fan_in)
        w = jax.random.uniform(kw, (fan_out, fan_in), jnp.float32, -bound, bound)
        b = jax.random.uniform(kb, (fan_out, 1), jnp.float32, -bound, bound)
        return w, b

    w1, b1 = linear(ks[0], ks[1], INPUT_SIZE, H1)
    w2, b2 = linear(ks[2], ks[3], H1, H2)
    w3, b3 = linear(ks[4], ks[5], H2, H3)
    w4, b4 = linear(ks[6], ks[7], H3, OUTPUT_SIZE)
    return dict(w1=w1, b1=b1, w2=w2, b2=b2, w3=w3, b3=b3, w4=w4, b4=b4)


def reference_forward(x, p):
    h = jnp.maximum(x @ p["w1"].T + p["b1"].T, 0.0)
    h = jnp.maximum(h @ p["w2"].T + p["b2"].T, 0.0)
    h = jnp.maximum(h @ p["w3"].T + p["b3"].T, 0.0)
    return h @ p["w4"].T + p["b4"].T


if __name__ == "__main__":
    key = jax.random.PRNGKey(0)
    k_params, k_x = jax.random.split(key)
    params = init_params(k_params)

    # Small demo batch.
    B = 8
    x = jax.random.normal(k_x, (B, INPUT_SIZE), jnp.float32)
    ref = reference_forward(x, params)

    # 1) Exact-semantics check in f32 (tight tolerance).
    out_f32 = jax.block_until_ready(suporte_ti_forward(x, params, use_bf16=False))
    assert out_f32.shape == (B, OUTPUT_SIZE)
    assert jnp.allclose(out_f32, ref, atol=1e-5, rtol=1e-5)

    # 2) Production path: bf16 MXU inputs (cast in-kernel), f32 accumulation.
    out_bf16 = jax.block_until_ready(suporte_ti_forward(x, params, use_bf16=True))
    assert out_bf16.shape == (B, OUTPUT_SIZE)
    assert jnp.allclose(out_bf16, ref, atol=5e-2, rtol=5e-2)

    # 3) Ragged batch + multi-step grid (v7x-style 2-way split across TensorCores).
    B2 = 200
    x2 = jax.random.normal(jax.random.PRNGKey(1), (B2, INPUT_SIZE), jnp.float32)
    out2 = jax.block_until_ready(
        suporte_ti_forward(x2, params, batch_tile=8192, min_grid_steps=2))
    assert out2.shape == (B2, OUTPUT_SIZE)
    assert jnp.allclose(out2, reference_forward(x2, params), atol=5e-2, rtol=5e-2)

    print("KERNEL_OK")
</pallas_src>

<mosaic_0001>
module attributes {stable_mosaic.version = 11 : i64} {
  func.func @mlp_kernel(%arg0: i32, %arg1: memref<128x128xf32, #tpu.memory_space<vmem>>, %arg2: memref<64x128xf32, #tpu.memory_space<vmem>>, %arg3: memref<64x1xf32, #tpu.memory_space<vmem>>, %arg4: memref<32x64xf32, #tpu.memory_space<vmem>>, %arg5: memref<32x1xf32, #tpu.memory_space<vmem>>, %arg6: memref<16x32xf32, #tpu.memory_space<vmem>>, %arg7: memref<16x1xf32, #tpu.memory_space<vmem>>, %arg8: memref<8x16xf32, #tpu.memory_space<vmem>>, %arg9: memref<8x1xf32, #tpu.memory_space<vmem>>, %arg10: memref<8x128xf32, #tpu.memory_space<vmem>>) attributes {dimension_semantics = [#tpu.dimension_semantics<parallel>], iteration_bounds = array<i64: 1>, scalar_prefetch = 0 : i64, scratch_operands = 0 : i64, tpu.core_type = #tpu.core_type<tc>, window_params = [{transform_indices = @transform_0, window_bounds = array<i64: 128, 128>}, {pipeline_mode = #tpu.pipeline_mode<synchronous>, transform_indices = @transform_1, window_bounds = array<i64: 64, 128>}, {pipeline_mode = #tpu.pipeline_mode<synchronous>, transform_indices = @transform_2, window_bounds = array<i64: 64, 1>}, {pipeline_mode = #tpu.pipeline_mode<synchronous>, transform_indices = @transform_3, window_bounds = array<i64: 32, 64>}, {pipeline_mode = #tpu.pipeline_mode<synchronous>, transform_indices = @transform_4, window_bounds = array<i64: 32, 1>}, {pipeline_mode = #tpu.pipeline_mode<synchronous>, transform_indices = @transform_5, window_bounds = array<i64: 16, 32>}, {pipeline_mode = #tpu.pipeline_mode<synchronous>, transform_indices = @transform_6, window_bounds = array<i64: 16, 1>}, {pipeline_mode = #tpu.pipeline_mode<synchronous>, transform_indices = @transform_7, window_bounds = array<i64: 8, 16>}, {pipeline_mode = #tpu.pipeline_mode<synchronous>, transform_indices = @transform_8, window_bounds = array<i64: 8, 1>}, {transform_indices = @transform_9, window_bounds = array<i64: 8, 128>}]} {
    %c0 = arith.constant 0 : index
    %c0_0 = arith.constant 0 : index
    %0 = vector.load %arg1[%c0, %c0_0] : memref<128x128xf32, #tpu.memory_space<vmem>>, vector<128x128xf32>
    %c0_1 = arith.constant 0 : index
    %c0_2 = arith.constant 0 : index
    %1 = vector.load %arg2[%c0_1, %c0_2] : memref<64x128xf32, #tpu.memory_space<vmem>>, vector<64x128xf32>
    %cst = arith.constant dense<0.000000e+00> : vector<64x128xf32>
    %2 = tpu.matmul %1, %0, %cst {dimension_numbers = #tpu.dot_dimension_numbers<[1], [1], [0], [0], [0, 0, 1, 0], [], []>} : vector<64x128xf32>, vector<128x128xf32>, vector<64x128xf32> -> vector<64x128xf32>
    %c0_3 = arith.constant 0 : index
    %c0_4 = arith.constant 0 : index
    %3 = vector.load %arg3[%c0_3, %c0_4] : memref<64x1xf32, #tpu.memory_space<vmem>>, vector<64x1xf32>
    %4 = vector.broadcast %3 : vector<64x1xf32> to vector<64x128xf32>
    %5 = arith.addf %2, %4 : vector<64x128xf32>
    %cst_5 = arith.constant 0.000000e+00 : f32
    %6 = vector.broadcast %cst_5 : f32 to vector<64x128xf32>
    %7 = arith.maximumf %5, %6 : vector<64x128xf32>
    %c0_6 = arith.constant 0 : index
    %c0_7 = arith.constant 0 : index
    %8 = vector.load %arg4[%c0_6, %c0_7] : memref<32x64xf32, #tpu.memory_space<vmem>>, vector<32x64xf32>
    %cst_8 = arith.constant dense<0.000000e+00> : vector<32x128xf32>
    %9 = tpu.matmul %8, %7, %cst_8 {dimension_numbers = #tpu.dot_dimension_numbers<[1], [0], [0], [1], [0, 0, 1, 1], [], []>} : vector<32x64xf32>, vector<64x128xf32>, vector<32x128xf32> -> vector<32x128xf32>
    %c0_9 = arith.constant 0 : index
    %c0_10 = arith.constant 0 : index
    %10 = vector.load %arg5[%c0_9, %c0_10] : memref<32x1xf32, #tpu.memory_space<vmem>>, vector<32x1xf32>
    %11 = vector.broadcast %10 : vector<32x1xf32> to vector<32x128xf32>
    %12 = arith.addf %9, %11 : vector<32x128xf32>
    %cst_11 = arith.constant 0.000000e+00 : f32
    %13 = vector.broadcast %cst_11 : f32 to vector<32x128xf32>
    %14 = arith.maximumf %12, %13 : vector<32x128xf32>
    %c0_12 = arith.constant 0 : index
    %c0_13 = arith.constant 0 : index
    %15 = vector.load %arg6[%c0_12, %c0_13] : memref<16x32xf32, #tpu.memory_space<vmem>>, vector<16x32xf32>
    %cst_14 = arith.constant dense<0.000000e+00> : vector<16x128xf32>
    %16 = tpu.matmul %15, %14, %cst_14 {dimension_numbers = #tpu.dot_dimension_numbers<[1], [0], [0], [1], [0, 0, 1, 1], [], []>} : vector<16x32xf32>, vector<32x128xf32>, vector<16x128xf32> -> vector<16x128xf32>
    %c0_15 = arith.constant 0 : index
    %c0_16 = arith.constant 0 : index
    %17 = vector.load %arg7[%c0_15, %c0_16] : memref<16x1xf32, #tpu.memory_space<vmem>>, vector<16x1xf32>
    %18 = vector.broadcast %17 : vector<16x1xf32> to vector<16x128xf32>
    %19 = arith.addf %16, %18 : vector<16x128xf32>
    %cst_17 = arith.constant 0.000000e+00 : f32
    %20 = vector.broadcast %cst_17 : f32 to vector<16x128xf32>
    %21 = arith.maximumf %19, %20 : vector<16x128xf32>
    %c0_18 = arith.constant 0 : index
    %c0_19 = arith.constant 0 : index
    %22 = vector.load %arg8[%c0_18, %c0_19] : memref<8x16xf32, #tpu.memory_space<vmem>>, vector<8x16xf32>
    %cst_20 = arith.constant dense<0.000000e+00> : vector<8x128xf32>
    %23 = tpu.matmul %22, %21, %cst_20 {dimension_numbers = #tpu.dot_dimension_numbers<[1], [0], [0], [1], [0, 0, 1, 1], [], []>} : vector<8x16xf32>, vector<16x128xf32>, vector<8x128xf32> -> vector<8x128xf32>
    %c0_21 = arith.constant 0 : index
    %c0_22 = arith.constant 0 : index
    %24 = vector.load %arg9[%c0_21, %c0_22] : memref<8x1xf32, #tpu.memory_space<vmem>>, vector<8x1xf32>
    %25 = vector.broadcast %24 : vector<8x1xf32> to vector<8x128xf32>
    %26 = arith.addf %23, %25 : vector<8x128xf32>
    %c0_23 = arith.constant 0 : index
    %c0_24 = arith.constant 0 : index
    %27 = vector.load %arg10[%c0_23, %c0_24] : memref<8x128xf32, #tpu.memory_space<vmem>>, vector<8x128xf32>
    tpu.vector_store %arg10[%c0_23, %c0_24], %26 {strides = array<i32>} : memref<8x128xf32, #tpu.memory_space<vmem>>, vector<8x128xf32>,
    return
  }
  func.func @transform_0(%arg0: i32) -> (i32, i32) {
    %c0_i32 = arith.constant 0 : i32
    %c0_i32_0 = arith.constant 0 : i32
    return %arg0, %c0_i32 : i32, i32
  }
  func.func @transform_1(%arg0: i32) -> (i32, i32) {
    %c0_i32 = arith.constant 0 : i32
    %c0_i32_0 = arith.constant 0 : i32
    %c0_i32_1 = arith.constant 0 : i32
    return %c0_i32, %c0_i32_0 : i32, i32
  }
  func.func @transform_2(%arg0: i32) -> (i32, i32) {
    %c0_i32 = arith.constant 0 : i32
    %c0_i32_0 = arith.constant 0 : i32
    %c0_i32_1 = arith.constant 0 : i32
    return %c0_i32, %c0_i32_0 : i32, i32
  }
  func.func @transform_3(%arg0: i32) -> (i32, i32) {
    %c0_i32 = arith.constant 0 : i32
    %c0_i32_0 = arith.constant 0 : i32
    %c0_i32_1 = arith.constant 0 : i32
    return %c0_i32, %c0_i32_0 : i32, i32
  }
  func.func @transform_4(%arg0: i32) -> (i32, i32) {
    %c0_i32 = arith.constant 0 : i32
    %c0_i32_0 = arith.constant 0 : i32
    %c0_i32_1 = arith.constant 0 : i32
    return %c0_i32, %c0_i32_0 : i32, i32
  }
  func.func @transform_5(%arg0: i32) -> (i32, i32) {
    %c0_i32 = arith.constant 0 : i32
    %c0_i32_0 = arith.constant 0 : i32
    %c0_i32_1 = arith.constant 0 : i32
    return %c0_i32, %c0_i32_0 : i32, i32
  }
  func.func @transform_6(%arg0: i32) -> (i32, i32) {
    %c0_i32 = arith.constant 0 : i32
    %c0_i32_0 = arith.constant 0 : i32
    %c0_i32_1 = arith.constant 0 : i32
    return %c0_i32, %c0_i32_0 : i32, i32
  }
  func.func @transform_7(%arg0: i32) -> (i32, i32) {
    %c0_i32 = arith.constant 0 : i32
    %c0_i32_0 = arith.constant 0 : i32
    %c0_i32_1 = arith.constant 0 : i32
    return %c0_i32, %c0_i32_0 : i32, i32
  }
  func.func @transform_8(%arg0: i32) -> (i32, i32) {
    %c0_i32 = arith.constant 0 : i32
    %c0_i32_0 = arith.constant 0 : i32
    %c0_i32_1 = arith.constant 0 : i32
    return %c0_i32, %c0_i32_0 : i32, i32
  }
  func.func @transform_9(%arg0: i32) -> (i32, i32) {
    %c0_i32 = arith.constant 0 : i32
    %c0_i32_0 = arith.constant 0 : i32
    return %c0_i32, %arg0 : i32, i32
  }
}

</mosaic_0001>

<bundles_post_ra>
// kernel: tpu_custom_call.1
= control target key start
LH: loop header
LB: loop body
LE: loop exit
PB: predicated region body
PF: predicated region fallthrough
CT: control target
= control target key end

     0   :  { %14 = vsyncpa [#allocation3], 0  ;;  %s905_s0 = inlined_call_operand.hbm [shape: f32[128,128], index: 0, kind: input, shape index: {}]   ;;  %s906_s1 = inlined_call_operand.vmem [shape: f32[64,128], index: 1, kind: input, shape index: {}]   ;;  %s907_s2 = inlined_call_operand.vmem [shape: f32[64,1], index: 2, kind: input, shape index: {}]   ;;  %s908_s3 = inlined_call_operand.vmem [shape: f32[32,64], index: 3, kind: input, shape index: {}]   ;;  %s909_s4 = inlined_call_operand.vmem [shape: f32[32,1], index: 4, kind: input, shape index: {}]   ;;  %s910_s5 = inlined_call_operand.vmem [shape: f32[16,32], index: 5, kind: input, shape index: {}]   ;;  %s911_s6 = inlined_call_operand.vmem [shape: f32[16,1], index: 6, kind: input, shape index: {}]   ;;  %s912_s7 = inlined_call_operand.vmem [shape: f32[8,16], index: 7, kind: input, shape index: {}]   ;;  %s913_s8 = inlined_call_operand.vmem [shape: f32[8,1], index: 8, kind: input, shape index: {}]   ;;  %s914_s9 = inlined_call_operand.hbm [shape: f32[8,128], index: 9, kind: output, shape index: {}]  }
   0x1   :  { %15 = vsyncpa [#allocation4], 0  ;;  %s746_s30 = smov [#allocation2]  }
   0x2   :  { %s21_s10 = sshll.u32 %s746_s30, 4  ;;  %s22_s10 = int_to_ptr.vmem [resolvable:$true] %s21_s10 }
   0x3   :  { %s710_s11 = scalar_lea.vmem %s22_s10, 2048  ;;  %p715_p1 = scmp.lt.s32.totalorder %s22_s10, %s22_s10 }
   0x4   :  { %p711_p0 = scmp.ne.s32.totalorder %s22_s10, %s710_s11  ;;  %p716_p2 = scmp.lt.s32.totalorder %s710_s11, %s710_s11 }
   0x6   :  { %p717_p3 = por %p716_p2, %p715_p1 }
   0x8   :  { %p718_p4 = pnand %p717_p3, %p711_p0 }
   0xa   :  { %721 = shalt.err (!%p718_p4)
}
   0xb   :  { %s747_s12 = smov 128   ;;  %s748_s13 = smov 8  }
   0xc   :  { %27 = dma.hbm_to_vmem [thread:$0]  %s905_s0, 2048, %s22_s10, [#allocation3], %s747_s12, %s747_s12, %s748_s13  }
   0xd   :  { %742 = dma.done.wait [#allocation3], 2048  }
   0xe   :  { %743 = vsyncadd [#allocation3], 4294965248  ;;  %v749_v0 = vmov 0   ;;  %v62_v1 = vld [vmem:[#allocation2 + $0x78] sm:$0xff]  ;;  %v61_v2 = vld [vmem:[#allocation2 + $0x70] sm:$0xff]  ;;  %vm260_vm0 = vcmask 523264  }
   0xf   :  { %700 = vset.pattern.permute.xlu0 %v749_v0  ;;  %701 = vset.pattern.permute.xlu1 %v749_v0  ;;  %v60_v3 = vld [vmem:[#allocation2 + $0x68] sm:$0xff]  ;;  %v63_v4 = vld [vmem:[%s906_s1] sm:$0xff]  ;;  %v78_v6 = vld [vmem:[%s907_s2 + $0x38] sm:$0xff]  ;;  %vm376_vm1 = vcmask 261120   ;;  %vm751_vm2 = vmmov 0   ;;  %vm467_vm3 = vcmask 130048  }
  0x10   :  { %609 = vmatprep.subr.mxu0 %v62_v1  ;;  %641 = vmatprep.mubr.f32.mxu0 %v63_v4  ;;  %v59_v5 = vld [vmem:[#allocation2 + $0x60] sm:$0xff]  ;;  %v76_v7 = vld [vmem:[%s907_s2 + $0x28] sm:$0xff]  ;;  %v77_v8 = vld [vmem:[%s907_s2 + $0x30] sm:$0xff] }
  0x11   :  { %610 = vmatpush3.xpose.msra.mxu0 %v62_v1  ;;  %116 = vperm.xlu0 %700, %v78_v6   ;;  %v75_v9 = vld [vmem:[%s907_s2 + $0x20] sm:$0xff]  ;;  %v58_v10 = vld [vmem:[#allocation2 + $0x58] sm:$0xff]  ;;  %v73_v12 = vld [vmem:[%s907_s2 + $0x10] sm:$0xff] }
  0x12   :  { %611 = vmatprep.subr.mxu0 %v61_v2  ;;  %106 = vperm.xlu1 %701, %v76_v7   ;;  %v74_v11 = vld [vmem:[%s907_s2 + $0x18] sm:$0xff]  ;;  %v57_v13 = vld [vmem:[#allocation2 + $0x50] sm:$0xff]  ;;  %v72_v14 = vld [vmem:[%s907_s2 + $0x8] sm:$0xff] }
  0x13   :  { %v71_v15 = vld [vmem:[%s907_s2] sm:$0xff]  ;;  %v56_v16 = vld [vmem:[#allocation2 + $0x48] sm:$0xff]  ;;  %v239_v17 = vld [vmem:[%s909_s4 + $0x18] sm:$0xff] }
  0x14   :  { %v238_v18 = vld [vmem:[%s909_s4 + $0x10] sm:$0xff]  ;;  %v55_v19 = vld [vmem:[#allocation2 + $0x40] sm:$0xff]  ;;  %v237_v20 = vld [vmem:[%s909_s4 + $0x8] sm:$0xff] }
  0x15   :  { %612 = vmatpush3.xpose.msra.mxu0 %v61_v2  ;;  %111 = vperm.xlu0 %700, %v77_v8   ;;  %v236_v21 = vld [vmem:[%s909_s4] sm:$0xff]  ;;  %v54_v22 = vld [vmem:[#allocation2 + $0x38] sm:$0xff]  ;;  %v365_v23 = vld [vmem:[%s911_s6 + $0x8] sm:$0xff] }
  0x16   :  { %613 = vmatprep.subr.mxu0 %v60_v3  ;;  %101 = vperm.xlu1 %701, %v75_v9   ;;  %v364_v24 = vld [vmem:[%s911_s6] sm:$0xff]  ;;  %v53_v25 = vld [vmem:[#allocation2 + $0x30] sm:$0xff]  ;;  %v52_v27 = vld [vmem:[#allocation2 + $0x28] sm:$0xff] }
  0x17   :  { %v461_v26 = vld [vmem:[%s913_s8] sm:$0xff]  ;;  %v50_v29 = vld [vmem:[#allocation2 + $0x18] sm:$0xff]  ;;  %v49_v30 = vld [vmem:[#allocation2 + $0x10] sm:$0xff] }
  0x18   :  { %v51_v28 = vld [vmem:[#allocation2 + $0x20] sm:$0xff]  ;;  %v48_v31 = vld [vmem:[#allocation2 + $0x8] sm:$0xff]  ;;  %v65_v34 = vld [vmem:[%s906_s1 + $0x10] sm:$0xff] }
  0x19   :  { %614 = vmatpush3.xpose.msra.mxu0 %v60_v3  ;;  %96 = vperm.xlu0 %700, %v74_v11   ;;  %v47_v32 = vld [vmem:[#allocation2] sm:$0xff]  ;;  %v64_v33 = vld [vmem:[%s906_s1 + $0x8] sm:$0xff]  ;;  %v66_v35 = vld [vmem:[%s906_s1 + $0x18] sm:$0xff] }
  0x1a   :  { %615 = vmatprep.subr.mxu0 %v59_v5  ;;  %91 = vperm.xlu1 %701, %v73_v12   ;;  %v67_v36 = vld [vmem:[%s906_s1 + $0x20] sm:$0xff]  ;;  %v68_v37 = vld [vmem:[%s906_s1 + $0x28] sm:$0xff]  ;;  %v69_v38 = vld [vmem:[%s906_s1 + $0x30] sm:$0xff] }
  0x1b   :  { %v70_v39 = vld [vmem:[%s906_s1 + $0x38] sm:$0xff]  ;;  %v232_v40 = vld [vmem:[%s908_s3] sm:$0xff]  ;;  %v233_v9 = vld [vmem:[%s908_s3 + $0x8] sm:$0xff] }
  0x1c   :  { %669 = vmatprep.mubr.msk.f32.mxu1 %vm260_vm0, %v232_v40  ;;  %v235_v11 = vld [vmem:[%s908_s3 + $0x18] sm:$0xff]  ;;  %v362_v12 = vld [vmem:[%s910_s5] sm:$0xff] }
  0x1d   :  { %616 = vmatpush3.xpose.msra.mxu0 %v59_v5  ;;  %86 = vperm.xlu0 %700, %v72_v14  }
  0x1e   :  { %617 = vmatprep.subr.mxu0 %v58_v10  ;;  %81 = vperm.xlu1 %701, %v71_v15  }
  0x21   :  { %618 = vmatpush3.xpose.msra.mxu0 %v58_v10  ;;  %257 = vperm.xlu0 %700, %v239_v17   ;;  %v234_v10 = vld [vmem:[%s908_s3 + $0x10] sm:$0xff] }
  0x22   :  { %619 = vmatprep.subr.mxu0 %v57_v13  ;;  %252 = vperm.xlu1 %701, %v238_v18  }
  0x25   :  { %620 = vmatpush3.xpose.msra.mxu0 %v57_v13  ;;  %247 = vperm.xlu0 %700, %v237_v20  }
  0x26   :  { %621 = vmatprep.subr.mxu0 %v56_v16  ;;  %242 = vperm.xlu1 %701, %v236_v21  }
  0x29   :  { %622 = vmatpush3.xpose.msra.mxu0 %v56_v16  ;;  %373 = vperm.xlu0 %700, %v365_v23  }
  0x2a   :  { %623 = vmatprep.subr.mxu0 %v55_v19  ;;  %368 = vperm.xlu1 %701, %v364_v24  }
  0x2d   :  { %624 = vmatpush3.xpose.msra.mxu0 %v55_v19  ;;  %464 = vperm.xlu0 %700, %v461_v26  }
  0x2e   :  { %625 = vmatprep.subr.mxu0 %v54_v22 }
  0x31   :  { %626 = vmatpush3.xpose.msra.mxu0 %v54_v22 }
  0x32   :  { %627 = vmatprep.subr.mxu0 %v53_v25 }
  0x35   :  { %628 = vmatpush3.xpose.msra.mxu0 %v53_v25 }
  0x36   :  { %629 = vmatprep.subr.mxu0 %v52_v27 }
  0x39   :  { %630 = vmatpush3.xpose.msra.mxu0 %v52_v27 }
  0x3a   :  { %631 = vmatprep.subr.mxu0 %v51_v28 }
  0x3d   :  { %632 = vmatpush3.xpose.msra.mxu0 %v51_v28 }
  0x3e   :  { %633 = vmatprep.subr.mxu0 %v50_v29 }
  0x41   :  { %634 = vmatpush3.xpose.msra.mxu0 %v50_v29  ;;  %v363_v29 = vld [vmem:[%s910_s5 + $0x8] sm:$0xff]  ;;  %s752_s5 = smov [#allocation5]  }
  0x42   :  { %635 = vmatprep.subr.mxu0 %v49_v30  ;;  %s548_s6 = sshll.u32 %s752_s5, 4  ;;  %s549_s6 = int_to_ptr.vmem [resolvable:$true] %s548_s6 }
  0x43   :  { %s722_s8 = scalar_lea.vmem %s549_s6, 128  ;;  %p727_p6 = scmp.lt.s32.totalorder %s549_s6, %s549_s6 }
  0x44   :  { %p723_p5 = scmp.ne.s32.totalorder %s549_s6, %s722_s8  ;;  %p728_p7 = scmp.lt.s32.totalorder %s722_s8, %s722_s8 }
  0x45   :  { %636 = vmatpush3.xpose.msra.mxu0 %v49_v30  ;;  %v750_v30 = vmov 0.0  }
  0x46   :  { %637 = vmatprep.subr.mxu0 %v48_v31  ;;  %p729_p8 = por %p728_p7, %p727_p6 }
  0x48   :  { %p730_p9 = pnand %p729_p8, %p723_p5 }
  0x49   :  { %638 = vmatpush3.xpose.msra.mxu0 %v48_v31 }
  0x4a   :  { %639 = vmatprep.subr.mxu0 %v47_v32 }
  0x4d   :  { %640 = vmatpush3.xpose.msra.mxu0 %v47_v32 }
  0x50   :  { %642 = vmatmul.mubr.f32.vlgmr.msra.gmra.mxu0 %v64_v33 }
  0x51   :  { %644 = vmatprep.mubr.f32.mxu0 %v65_v34 }
  0x54   :  { %645 = vmatmul.mubr.f32.gmra.mxu0 %v66_v35 }
  0x55   :  { %647 = vmatprep.mubr.f32.mxu0 %v67_v36 }
  0x58   :  { %648 = vmatmul.mubr.f32.gmra.mxu0 %v68_v37 }
  0x59   :  { %650 = vmatprep.mubr.f32.mxu0 %v69_v38 }
  0x5c   :  { %651 = vmatmul.mubr.f32.gmra.mxu0 %v70_v39  ;;  %v460_v39 = vld [vmem:[%s912_s7] sm:$0xff] }
  0x8c   :  { %v117_v43 = vpop.permute.xlu0 %116 }
  0x8d   :  { %v107_v44 = vpop.permute.xlu1 %106 }
  0x90   :  { %v112_v48 = vpop.permute.xlu0 %111 }
  0x91   :  { %v102_v49 = vpop.permute.xlu1 %101 }
  0x94   :  { %v97_v57 = vpop.permute.xlu0 %96 }
  0x95   :  { %v92_v58 = vpop.permute.xlu1 %91 }
  0x98   :  { %v87_v1 = vpop.permute.xlu0 %86 }
  0x99   :  { %v82_v2 = vpop.permute.xlu1 %81 }
  0x9c   :  { %v258_v13 = vpop.permute.xlu0 %257 }
  0x9d   :  { %v253_v15 = vpop.permute.xlu1 %252 }
  0xa0   :  { %v248_v19 = vpop.permute.xlu0 %247 }
  0xa1   :  { %v243_v24 = vpop.permute.xlu1 %242 }
  0xa4   :  { %v374_v31 = vpop.permute.xlu0 %373 }
  0xa5   :  { %v369_v34 = vpop.permute.xlu1 %368 }
  0xa8   :  { %v465_v40 = vpop.permute.xlu0 %464 }
 0x110   :  { %v643_v41 = vpop.f32.mrf.mxu0 }
 0x111   :  { %v191_v3 = vadd.f32 %v643_v41, %v87_v1 }
 0x112   :  { %v185_v42 = vpop.f32.mrf.mxu0 }
 0x113   :  { %v186_v5 = vadd.f32 %v185_v42, %v82_v2  ;;  %v225_v7 = vmax.f32 %v191_v3, 0.0 }
 0x114   :  { %v646_v45 = vpop.f32.mrf.mxu0 }
 0x115   :  { %v201_v61 = vadd.f32 %v646_v45, %v97_v57  ;;  %v224_v8 = vmax.f32 %v186_v5, 0.0 }
 0x116   :  { %v195_v46 = vpop.f32.mrf.mxu0 }
 0x117   :  { %v196_v63 = vadd.f32 %v195_v46, %v92_v58  ;;  %v227_v4 = vmax.f32 %v201_v61, 0.0 }
 0x118   :  { %v649_v47 = vpop.f32.mrf.mxu0 }
 0x119   :  { %v211_v54 = vadd.f32 %v649_v47, %v107_v44  ;;  %v226_v6 = vmax.f32 %v196_v63, 0.0 }
 0x11a   :  { %v205_v50 = vpop.f32.mrf.mxu0 }
 0x11b   :  { %v206_v59 = vadd.f32 %v205_v50, %v102_v49  ;;  %v229_v62 = vmax.f32 %v211_v54, 0.0 }
 0x11c   :  { %v652_v51 = vpop.f32.mrf.mxu0 }
 0x11d   :  { %v221_v52 = vadd.f32 %v652_v51, %v117_v43  ;;  %v228_v0 = vmax.f32 %v206_v59, 0.0 }
 0x11e   :  { %v215_v53 = vpop.f32.mrf.mxu0 }
 0x11f   :  { %v231_v55 = vmax.f32 %v221_v52, 0.0  ;;  %v216_v56 = vadd.f32 %v215_v53, %v112_v48 }
 0x121   :  { %v230_v60 = vmax.f32 %v216_v56, 0.0  ;;  %653 = vmatprep.subr.mxu1 %v231_v55 }
 0x122   :  { %654 = vmatpush3.msra.mxu1 %v231_v55 }
 0x123   :  { %655 = vmatprep.subr.mxu1 %v230_v60 }
 0x124   :  { %656 = vmatpush3.msra.mxu1 %v230_v60 }
 0x125   :  { %657 = vmatprep.subr.mxu1 %v229_v62 }
 0x126   :  { %658 = vmatpush3.msra.mxu1 %v229_v62 }
 0x127   :  { %659 = vmatprep.subr.mxu1 %v228_v0 }
 0x128   :  { %660 = vmatpush3.msra.mxu1 %v228_v0 }
 0x129   :  { %661 = vmatprep.subr.mxu1 %v227_v4 }
 0x12a   :  { %662 = vmatpush3.msra.mxu1 %v227_v4 }
 0x12b   :  { %663 = vmatprep.subr.mxu1 %v226_v6 }
 0x12c   :  { %664 = vmatpush3.msra.mxu1 %v226_v6 }
 0x12d   :  { %665 = vmatprep.subr.mxu1 %v225_v7 }
 0x12e   :  { %666 = vmatpush3.msra.mxu1 %v225_v7 }
 0x12f   :  { %667 = vmatprep.subr.mxu1 %v224_v8 }
 0x130   :  { %668 = vmatpush3.msra.mxu1 %v224_v8 }
 0x131   :  { %670 = vmatmul.mubr.msk.f32.vlgmr.msra.gmra.mxu1 %vm260_vm0, %v233_v9 }
 0x132   :  { %672 = vmatprep.mubr.msk.f32.mxu1 %vm260_vm0, %v234_v10 }
 0x135   :  { %673 = vmatmul.mubr.msk.f32.gmra.mxu1 %vm260_vm0, %v235_v11 }
 0x136   :  { %683 = vmatprep.mubr.msk.f32.mxu1 %vm376_vm1, %v362_v12 }
 0x1f1   :  { %v671_v14 = vpop.f32.mrf.mxu1 }
 0x1f2   :  { %v345_v21 = vadd.f32 %v671_v14, %v248_v19 }
 0x1f3   :  { %v339_v16 = vpop.f32.mrf.mxu1 }
 0x1f4   :  { %v340_v25 = vadd.f32 %v339_v16, %v243_v24  ;;  %v359_v27 = vmax.f32 %v345_v21, 0.0 }
 0x1f5   :  { %v674_v17 = vpop.f32.mrf.mxu1 }
 0x1f6   :  { %v355_v18 = vadd.f32 %v674_v17, %v258_v13  ;;  %v358_v28 = vmax.f32 %v340_v25, 0.0 }
 0x1f7   :  { %v349_v20 = vpop.f32.mrf.mxu1 }
 0x1f8   :  { %v361_v22 = vmax.f32 %v355_v18, 0.0  ;;  %v350_v23 = vadd.f32 %v349_v20, %v253_v15 }
 0x1fa   :  { %v360_v26 = vmax.f32 %v350_v23, 0.0  ;;  %675 = vmatprep.subr.mxu1 %v361_v22 }
 0x1fb   :  { %676 = vmatpush3.msra.mxu1 %v361_v22 }
 0x1fc   :  { %677 = vmatprep.subr.mxu1 %v360_v26 }
 0x1fd   :  { %678 = vmatpush3.msra.mxu1 %v360_v26 }
 0x1fe   :  { %679 = vmatprep.subr.mxu1 %v359_v27 }
 0x1ff   :  { %680 = vmatpush3.msra.mxu1 %v359_v27 }
 0x200   :  { %681 = vmatprep.subr.mxu1 %v358_v28 }
 0x201   :  { %682 = vmatpush3.msra.mxu1 %v358_v28 }
 0x202   :  { %684 = vmatmul.mubr.msk.f32.vlgmr.msra.gmra.mxu1 %vm376_vm1, %v363_v29  ;;  %686 = vmatprep.subr.mxu1 %v750_v30 }
 0x203   :  { %690 = vmatprep.mubr.msk.f32.mxu1 %vm751_vm2, %v750_v30 }
 0x2c2   :  { %v685_v32 = vpop.f32.mrf.mxu1 }
 0x2c3   :  { %v455_v33 = vadd.f32 %v685_v32, %v374_v31 }
 0x2c4   :  { %v449_v35 = vpop.f32.mrf.mxu1 }
 0x2c5   :  { %v459_v36 = vmax.f32 %v455_v33, 0.0  ;;  %v450_v37 = vadd.f32 %v449_v35, %v369_v34 }
 0x2c7   :  { %v458_v38 = vmax.f32 %v450_v37, 0.0  ;;  %687 = vmatpush3.msra.mxu1 %v459_v36 }
 0x2c8   :  { %688 = vmatprep.subr.mxu1 %v750_v30 }
 0x2c9   :  { %689 = vmatpush3.msra.mxu1 %v458_v38 }
 0x2ca   :  { %691 = vmatmul.mubr.msk.f32.vlgmr.msra.gmra.mxu1 %vm467_vm3, %v460_v39 }
 0x38a   :  { %v537_v41 = vpop.f32.mrf.mxu1 }
 0x38b   :  { %v538_v42 = vadd.f32 %v537_v41, %v465_v40 }
 0x38c   :  { %v692_v43 = vpop.f32.mrf.mxu1 }
 0x38d   :  { %541 = vst [vmem:[#allocation5] sm:$0xff] %v538_v42 }
 0x38e   :  { %733 = shalt.err (!%p730_p9)
}
 0x38f   :  { %551 = dma.vmem_to_hbm [thread:$0]  %s549_s6, 128, %s914_s9, [#allocation4]  }
 0x390   :  { %744 = dma.done.wait [#allocation4], 128  }
 0x391   :  { %745 = vsyncadd [#allocation4], 4294967168 }
 0x392   :  { %555 = vsyncpa [#allocation3], 1 }
 0x393   :  { %556 = vsyncpa [#allocation4], 1 }

</bundles_post_ra>
